<compile_context>
chip_gen: v5e
topology: v5e:2x2
jax: 0.10.0
libtpu: 0.0.40
codegen_flags: <defaults>
</compile_context>

<pallas_src>
import math
import functools

import jax
import jax.numpy as jnp
from jax.experimental import pallas as pl
from jax.experimental.pallas import tpu as pltpu  # noqa: F401  (TPU memory spaces / params if scaled up)

_LANE = 128          # vreg lane width
_UNROLL_LIMIT = 32   # fully unroll the recurrence for T <= this


def _round_up(n, m):
    return ((n + m - 1) // m) * m


def _rnn_kernel(x_ref, wx_ref, wh_ref, wo_ref, bh_ref, bo_ref, h0_ref, out_ref,
                *, seq_length):
    x = x_ref[...]        # (B, T)     float32
    Wx = wx_ref[...]      # (1, Hp)
    Wh = wh_ref[...]      # (Hp, Hp)
    Wo = wo_ref[...]      # (Hp, Cp)
    bh = bh_ref[...]      # (1, Hp)
    bo = bo_ref[...]      # (1, Cp)
    h = h0_ref[...]       # (B, Hp)

    def step(h, ct):
        # Wh is identical every step -> Mosaic hoists the MXU weight push out
        # of the unrolled loop; only the LHS (h) changes per iteration.
        return jnp.tanh(jnp.dot(h, Wh, preferred_element_type=jnp.float32) + ct)

    if seq_length <= _UNROLL_LIMIT:
        # Hoist the input projection + bias: no dependence on h, so these
        # broadcasts/adds schedule off the serial dot->tanh critical path.
        cs = [x[:, t:t + 1] * Wx + bh for t in range(seq_length)]
        for t in range(seq_length):
            h = step(h, cs[t])
    else:
        # Large T: one bulk VPU pass to build the (B, T, Hp) slab, then a
        # partially unrolled fori_loop bounds code size / vreg live ranges.
        c = x[:, :, None] * Wx[None, :, :] + bh[None, :, :]

        def body(t, h):
            ct = jax.lax.dynamic_slice_in_dim(c, t, 1, axis=1)[:, 0, :]
            return step(h, ct)

        h = jax.lax.fori_loop(0, seq_length, body, h, unroll=4)

    # Output projection.  Cp is a multiple of 128 -> lane-dense unmasked store.
    out_ref[...] = jnp.dot(h, Wo, preferred_element_type=jnp.float32) + bo


def vanilla_rnn_forward(x, Wx, Wh, Wo, bh, bo, h_init):
    """x: (B, T) float32 -> (B, num_classes) float32."""
    B, T = x.shape
    H = Wh.shape[0]
    C = Wo.shape[1]

    # Pad hidden / class dims to full 128-lane tiles with zeros (math unchanged).
    Hp = max(_LANE, _round_up(H, _LANE))
    Cp = max(_LANE, _round_up(C, _LANE))
    f32 = jnp.float32

    Wx_p = jnp.pad(Wx.astype(f32), ((0, 0), (0, Hp - H)))
    Wh_p = jnp.pad(Wh.astype(f32), ((0, Hp - H), (0, Hp - H)))
    Wo_p = jnp.pad(Wo.astype(f32), ((0, Hp - H), (0, Cp - C)))
    bh_p = jnp.pad(bh.astype(f32).reshape(1, H), ((0, 0), (0, Hp - H)))
    bo_p = jnp.pad(bo.astype(f32).reshape(1, C), ((0, 0), (0, Cp - C)))
    h0_p = jnp.pad(h_init.astype(f32), ((0, 0), (0, Hp - H)))

    full = lambda arr: pl.BlockSpec(arr.shape, lambda: (0,) * arr.ndim)
    kernel = functools.partial(_rnn_kernel, seq_length=T)

    out_p = pl.pallas_call(
        kernel,
        out_shape=jax.ShapeDtypeStruct((B, Cp), f32),
        grid=(),
        in_specs=[full(x), full(Wx_p), full(Wh_p), full(Wo_p),
                  full(bh_p), full(bo_p), full(h0_p)],
        out_specs=pl.BlockSpec((B, Cp), lambda: (0, 0)),
    )(x.astype(f32), Wx_p, Wh_p, Wo_p, bh_p, bo_p, h0_p)

    # Slice the zero-padded class lanes back off outside the kernel.
    return out_p[:, :C]


def make_params(key, input_dim, num_hidden, num_classes, batch_size):
    """Deterministic init mirroring the PyTorch __init__ (incl. its stdv_c
    quirk for Wh — kept on purpose to match the module exactly)."""
    stdv_h = 1.0 / math.sqrt(num_hidden)
    stdv_c = 1.0 / math.sqrt(num_classes)
    k1, k2, k3 = jax.random.split(key, 3)
    Wx = jax.random.uniform(k1, (input_dim, num_hidden), jnp.float32,
                            minval=-stdv_h, maxval=stdv_h)
    Wh = jax.random.uniform(k2, (num_hidden, num_hidden), jnp.float32,
                            minval=-stdv_c, maxval=stdv_c)
    Wo = jax.random.uniform(k3, (num_hidden, num_classes), jnp.float32,
                            minval=-stdv_c, maxval=stdv_c)
    bh = jnp.zeros((num_hidden,), jnp.float32)
    bo = jnp.zeros((num_classes,), jnp.float32)
    h_init = jnp.zeros((batch_size, num_hidden), jnp.float32)
    return Wx, Wh, Wo, bh, bo, h_init


def reference_forward(x, Wx, Wh, Wo, bh, bo, h_init):
    """Pure-JAX reference matching the PyTorch forward exactly."""
    h = h_init
    T = x.shape[1]
    for t in range(T):
        h = jnp.tanh(x[:, t:t + 1] @ Wx + h @ Wh + bh)
    return h @ Wo + bo


if __name__ == "__main__":
    # Small shapes consistent with the module's forward:
    # x : (batch_size, seq_length), input_dim = 1 (scalar per step).
    batch_size, seq_length = 8, 8
    input_dim, num_hidden, num_classes = 1, 32, 10

    key = jax.random.PRNGKey(0)
    kx, kp = jax.random.split(key)
    x = jax.random.normal(kx, (batch_size, seq_length), jnp.float32)
    Wx, Wh, Wo, bh, bo, h_init = make_params(
        kp, input_dim, num_hidden, num_classes, batch_size)

    rnn = jax.jit(vanilla_rnn_forward)
    out = rnn(x, Wx, Wh, Wo, bh, bo, h_init)
    out = jax.block_until_ready(out)

    ref = reference_forward(x, Wx, Wh, Wo, bh, bo, h_init)
    assert out.shape == (batch_size, num_classes)
    assert jnp.allclose(out, ref, atol=1e-5, rtol=1e-5)

    print("KERNEL_OK")
</pallas_src>

<mosaic_0001>
module attributes {stable_mosaic.version = 11 : i64} {
  func.func @_rnn_kernel(%arg0: memref<8x8xf32, #tpu.memory_space<vmem>>, %arg1: memref<1x128xf32, #tpu.memory_space<vmem>>, %arg2: memref<128x128xf32, #tpu.memory_space<vmem>>, %arg3: memref<128x128xf32, #tpu.memory_space<vmem>>, %arg4: memref<1x128xf32, #tpu.memory_space<vmem>>, %arg5: memref<1x128xf32, #tpu.memory_space<vmem>>, %arg6: memref<8x128xf32, #tpu.memory_space<vmem>>, %arg7: memref<8x128xf32, #tpu.memory_space<vmem>>) attributes {dimension_semantics = [], scalar_prefetch = 0 : i64, scratch_operands = 0 : i64, tpu.core_type = #tpu.core_type<tc>} {
    %c0 = arith.constant 0 : index
    %c0_0 = arith.constant 0 : index
    %0 = vector.load %arg0[%c0, %c0_0] : memref<8x8xf32, #tpu.memory_space<vmem>>, vector<8x8xf32>
    %c0_1 = arith.constant 0 : index
    %c0_2 = arith.constant 0 : index
    %1 = vector.load %arg1[%c0_1, %c0_2] : memref<1x128xf32, #tpu.memory_space<vmem>>, vector<1x128xf32>
    %c0_3 = arith.constant 0 : index
    %c0_4 = arith.constant 0 : index
    %2 = vector.load %arg2[%c0_3, %c0_4] : memref<128x128xf32, #tpu.memory_space<vmem>>, vector<128x128xf32>
    %c0_5 = arith.constant 0 : index
    %c0_6 = arith.constant 0 : index
    %3 = vector.load %arg3[%c0_5, %c0_6] : memref<128x128xf32, #tpu.memory_space<vmem>>, vector<128x128xf32>
    %c0_7 = arith.constant 0 : index
    %c0_8 = arith.constant 0 : index
    %4 = vector.load %arg4[%c0_7, %c0_8] : memref<1x128xf32, #tpu.memory_space<vmem>>, vector<1x128xf32>
    %c0_9 = arith.constant 0 : index
    %c0_10 = arith.constant 0 : index
    %5 = vector.load %arg5[%c0_9, %c0_10] : memref<1x128xf32, #tpu.memory_space<vmem>>, vector<1x128xf32>
    %c0_11 = arith.constant 0 : index
    %c0_12 = arith.constant 0 : index
    %6 = vector.load %arg6[%c0_11, %c0_12] : memref<8x128xf32, #tpu.memory_space<vmem>>, vector<8x128xf32>
    %7 = vector.extract_strided_slice %0 {offsets = [0, 0], sizes = [8, 1], strides = [1, 1]} : vector<8x8xf32> to vector<8x1xf32>
    %8 = vector.broadcast %7 : vector<8x1xf32> to vector<8x128xf32>
    %9 = vector.broadcast %1 : vector<1x128xf32> to vector<8x128xf32>
    %10 = arith.mulf %8, %9 : vector<8x128xf32>
    %11 = vector.broadcast %4 : vector<1x128xf32> to vector<8x128xf32>
    %12 = arith.addf %10, %11 : vector<8x128xf32>
    %13 = vector.extract_strided_slice %0 {offsets = [0, 1], sizes = [8, 1], strides = [1, 1]} : vector<8x8xf32> to vector<8x1xf32>
    %14 = vector.broadcast %13 : vector<8x1xf32> to vector<8x128xf32>
    %15 = vector.broadcast %1 : vector<1x128xf32> to vector<8x128xf32>
    %16 = arith.mulf %14, %15 : vector<8x128xf32>
    %17 = vector.broadcast %4 : vector<1x128xf32> to vector<8x128xf32>
    %18 = arith.addf %16, %17 : vector<8x128xf32>
    %19 = vector.extract_strided_slice %0 {offsets = [0, 2], sizes = [8, 1], strides = [1, 1]} : vector<8x8xf32> to vector<8x1xf32>
    %20 = vector.broadcast %19 : vector<8x1xf32> to vector<8x128xf32>
    %21 = vector.broadcast %1 : vector<1x128xf32> to vector<8x128xf32>
    %22 = arith.mulf %20, %21 : vector<8x128xf32>
    %23 = vector.broadcast %4 : vector<1x128xf32> to vector<8x128xf32>
    %24 = arith.addf %22, %23 : vector<8x128xf32>
    %25 = vector.extract_strided_slice %0 {offsets = [0, 3], sizes = [8, 1], strides = [1, 1]} : vector<8x8xf32> to vector<8x1xf32>
    %26 = vector.broadcast %25 : vector<8x1xf32> to vector<8x128xf32>
    %27 = vector.broadcast %1 : vector<1x128xf32> to vector<8x128xf32>
    %28 = arith.mulf %26, %27 : vector<8x128xf32>
    %29 = vector.broadcast %4 : vector<1x128xf32> to vector<8x128xf32>
    %30 = arith.addf %28, %29 : vector<8x128xf32>
    %31 = vector.extract_strided_slice %0 {offsets = [0, 4], sizes = [8, 1], strides = [1, 1]} : vector<8x8xf32> to vector<8x1xf32>
    %32 = vector.broadcast %31 : vector<8x1xf32> to vector<8x128xf32>
    %33 = vector.broadcast %1 : vector<1x128xf32> to vector<8x128xf32>
    %34 = arith.mulf %32, %33 : vector<8x128xf32>
    %35 = vector.broadcast %4 : vector<1x128xf32> to vector<8x128xf32>
    %36 = arith.addf %34, %35 : vector<8x128xf32>
    %37 = vector.extract_strided_slice %0 {offsets = [0, 5], sizes = [8, 1], strides = [1, 1]} : vector<8x8xf32> to vector<8x1xf32>
    %38 = vector.broadcast %37 : vector<8x1xf32> to vector<8x128xf32>
    %39 = vector.broadcast %1 : vector<1x128xf32> to vector<8x128xf32>
    %40 = arith.mulf %38, %39 : vector<8x128xf32>
    %41 = vector.broadcast %4 : vector<1x128xf32> to vector<8x128xf32>
    %42 = arith.addf %40, %41 : vector<8x128xf32>
    %43 = vector.extract_strided_slice %0 {offsets = [0, 6], sizes = [8, 1], strides = [1, 1]} : vector<8x8xf32> to vector<8x1xf32>
    %44 = vector.broadcast %43 : vector<8x1xf32> to vector<8x128xf32>
    %45 = vector.broadcast %1 : vector<1x128xf32> to vector<8x128xf32>
    %46 = arith.mulf %44, %45 : vector<8x128xf32>
    %47 = vector.broadcast %4 : vector<1x128xf32> to vector<8x128xf32>
    %48 = arith.addf %46, %47 : vector<8x128xf32>
    %49 = vector.extract_strided_slice %0 {offsets = [0, 7], sizes = [8, 1], strides = [1, 1]} : vector<8x8xf32> to vector<8x1xf32>
    %50 = vector.broadcast %49 : vector<8x1xf32> to vector<8x128xf32>
    %51 = vector.broadcast %1 : vector<1x128xf32> to vector<8x128xf32>
    %52 = arith.mulf %50, %51 : vector<8x128xf32>
    %53 = vector.broadcast %4 : vector<1x128xf32> to vector<8x128xf32>
    %54 = arith.addf %52, %53 : vector<8x128xf32>
    %cst = arith.constant dense<0.000000e+00> : vector<8x128xf32>
    %55 = tpu.matmul %6, %2, %cst {dimension_numbers = #tpu.dot_dimension_numbers<[1], [0], [0], [1], [0, 0, 1, 1], [], []>} : vector<8x128xf32>, vector<128x128xf32>, vector<8x128xf32> -> vector<8x128xf32>
    %56 = arith.addf %55, %12 : vector<8x128xf32>
    %57 = math.tanh %56 : vector<8x128xf32>
    %cst_13 = arith.constant dense<0.000000e+00> : vector<8x128xf32>
    %58 = tpu.matmul %57, %2, %cst_13 {dimension_numbers = #tpu.dot_dimension_numbers<[1], [0], [0], [1], [0, 0, 1, 1], [], []>} : vector<8x128xf32>, vector<128x128xf32>, vector<8x128xf32> -> vector<8x128xf32>
    %59 = arith.addf %58, %18 : vector<8x128xf32>
    %60 = math.tanh %59 : vector<8x128xf32>
    %cst_14 = arith.constant dense<0.000000e+00> : vector<8x128xf32>
    %61 = tpu.matmul %60, %2, %cst_14 {dimension_numbers = #tpu.dot_dimension_numbers<[1], [0], [0], [1], [0, 0, 1, 1], [], []>} : vector<8x128xf32>, vector<128x128xf32>, vector<8x128xf32> -> vector<8x128xf32>
    %62 = arith.addf %61, %24 : vector<8x128xf32>
    %63 = math.tanh %62 : vector<8x128xf32>
    %cst_15 = arith.constant dense<0.000000e+00> : vector<8x128xf32>
    %64 = tpu.matmul %63, %2, %cst_15 {dimension_numbers = #tpu.dot_dimension_numbers<[1], [0], [0], [1], [0, 0, 1, 1], [], []>} : vector<8x128xf32>, vector<128x128xf32>, vector<8x128xf32> -> vector<8x128xf32>
    %65 = arith.addf %64, %30 : vector<8x128xf32>
    %66 = math.tanh %65 : vector<8x128xf32>
    %cst_16 = arith.constant dense<0.000000e+00> : vector<8x128xf32>
    %67 = tpu.matmul %66, %2, %cst_16 {dimension_numbers = #tpu.dot_dimension_numbers<[1], [0], [0], [1], [0, 0, 1, 1], [], []>} : vector<8x128xf32>, vector<128x128xf32>, vector<8x128xf32> -> vector<8x128xf32>
    %68 = arith.addf %67, %36 : vector<8x128xf32>
    %69 = math.tanh %68 : vector<8x128xf32>
    %cst_17 = arith.constant dense<0.000000e+00> : vector<8x128xf32>
    %70 = tpu.matmul %69, %2, %cst_17 {dimension_numbers = #tpu.dot_dimension_numbers<[1], [0], [0], [1], [0, 0, 1, 1], [], []>} : vector<8x128xf32>, vector<128x128xf32>, vector<8x128xf32> -> vector<8x128xf32>
    %71 = arith.addf %70, %42 : vector<8x128xf32>
    %72 = math.tanh %71 : vector<8x128xf32>
    %cst_18 = arith.constant dense<0.000000e+00> : vector<8x128xf32>
    %73 = tpu.matmul %72, %2, %cst_18 {dimension_numbers = #tpu.dot_dimension_numbers<[1], [0], [0], [1], [0, 0, 1, 1], [], []>} : vector<8x128xf32>, vector<128x128xf32>, vector<8x128xf32> -> vector<8x128xf32>
    %74 = arith.addf %73, %48 : vector<8x128xf32>
    %75 = math.tanh %74 : vector<8x128xf32>
    %cst_19 = arith.constant dense<0.000000e+00> : vector<8x128xf32>
    %76 = tpu.matmul %75, %2, %cst_19 {dimension_numbers = #tpu.dot_dimension_numbers<[1], [0], [0], [1], [0, 0, 1, 1], [], []>} : vector<8x128xf32>, vector<128x128xf32>, vector<8x128xf32> -> vector<8x128xf32>
    %77 = arith.addf %76, %54 : vector<8x128xf32>
    %78 = math.tanh %77 : vector<8x128xf32>
    %cst_20 = arith.constant dense<0.000000e+00> : vector<8x128xf32>
    %79 = tpu.matmul %78, %3, %cst_20 {dimension_numbers = #tpu.dot_dimension_numbers<[1], [0], [0], [1], [0, 0, 1, 1], [], []>} : vector<8x128xf32>, vector<128x128xf32>, vector<8x128xf32> -> vector<8x128xf32>
    %80 = vector.broadcast %5 : vector<1x128xf32> to vector<8x128xf32>
    %81 = arith.addf %79, %80 : vector<8x128xf32>
    %c0_21 = arith.constant 0 : index
    %c0_22 = arith.constant 0 : index
    %82 = vector.load %arg7[%c0_21, %c0_22] : memref<8x128xf32, #tpu.memory_space<vmem>>, vector<8x128xf32>
    tpu.vector_store %arg7[%c0_21, %c0_22], %81 {strides = array<i32>} : memref<8x128xf32, #tpu.memory_space<vmem>>, vector<8x128xf32>,
    return
  }
}

</mosaic_0001>

<bundles_post_ra>
// kernel: vanilla_rnn_forward.1
= control target key start
LH: loop header
LB: loop body
LE: loop exit
PB: predicated region body
PF: predicated region fallthrough
CT: control target
= control target key end

     0   :  { %v390_v2 = vmov 0   ;;  %s743_s0 = inlined_call_operand.vmem [shape: f32[8,8], index: 0, kind: input, shape index: {}]   ;;  %s744_s1 = inlined_call_operand.vmem [shape: f32[1,128], index: 1, kind: input, shape index: {}]   ;;  %s745_s2 = inlined_call_operand.vmem [shape: f32[128,128], index: 2, kind: input, shape index: {}]   ;;  %s746_s3 = inlined_call_operand.vmem [shape: f32[128,128], index: 3, kind: input, shape index: {}]   ;;  %s747_s4 = inlined_call_operand.vmem [shape: f32[1,128], index: 4, kind: input, shape index: {}]   ;;  %s748_s5 = inlined_call_operand.vmem [shape: f32[1,128], index: 5, kind: input, shape index: {}]   ;;  %s749_s6 = inlined_call_operand.vmem [shape: f32[8,128], index: 6, kind: input, shape index: {}]   ;;  %s750_s7 = inlined_call_operand.hbm [shape: f32[8,128], index: 7, kind: output, shape index: {}]  }
   0x1   :  { %v442_v0 = vld [vmem:[%s745_s2 + $0x78] sm:$0xff]  ;;  %v447_v1 = vld [vmem:[%s745_s2 + $0x70] sm:$0xff]  ;;  %336 = vset.pattern.permute.xlu0 %v390_v2  ;;  %v453_v3 = vld [vmem:[%s745_s2 + $0x68] sm:$0xff] }
   0x2   :  { %119 = vmatpush.msra.mxu0 %v442_v0  ;;  %140 = vmatpush.msra.mxu1 %v442_v0  ;;  %v462_v4 = vld [vmem:[%s745_s2 + $0x60] sm:$0xff]  ;;  %v476_v6 = vld [vmem:[%s745_s2 + $0x58] sm:$0xff] }
   0x3   :  { %161 = vmatpush.msra.mxu2 %v442_v0  ;;  %182 = vmatpush.msra.mxu3 %v442_v0  ;;  %v470_v5 = vld [vmem:[%s743_s0] sm:$0xff] }
   0x4   :  { %120 = vmatpush.msra.mxu0 %v447_v1  ;;  %141 = vmatpush.msra.mxu1 %v447_v1 }
   0x5   :  { %162 = vmatpush.msra.mxu2 %v447_v1  ;;  %183 = vmatpush.msra.mxu3 %v447_v1 }
   0x6   :  { %121 = vmatpush.msra.mxu0 %v453_v3  ;;  %66 = vperm.xlu0 %336, %v470_v5  }
   0x7   :  { %142 = vmatpush.msra.mxu1 %v453_v3  ;;  %163 = vmatpush.msra.mxu2 %v453_v3 }
   0x8   :  { %122 = vmatpush.msra.mxu0 %v462_v4 }
   0x9   :  { %12 = vsyncpa [#allocation3], 0  ;;  %v485_v7 = vld [vmem:[%s745_s2 + $0x50] sm:$0xff]  ;;  %143 = vmatpush.msra.mxu1 %v462_v4  ;;  %184 = vmatpush.msra.mxu3 %v453_v3  ;;  %v494_v8 = vld [vmem:[%s745_s2 + $0x48] sm:$0xff]  ;;  %v391_v19 = vmov 1   ;;  %v392_v28 = vmov 2  }
   0xa   :  { %123 = vmatpush.msra.mxu0 %v476_v6  ;;  %164 = vmatpush.msra.mxu2 %v462_v4  ;;  %v503_v9 = vld [vmem:[%s745_s2 + $0x40] sm:$0xff]  ;;  %v512_v10 = vld [vmem:[%s745_s2 + $0x38] sm:$0xff]  ;;  %v521_v11 = vld [vmem:[%s745_s2 + $0x30] sm:$0xff]  ;;  %v393_v35 = vmov 3   ;;  %v394_v42 = vmov 4   ;;  %v395_v49 = vmov 5  }
   0xb   :  { %144 = vmatpush.msra.mxu1 %v476_v6  ;;  %185 = vmatpush.msra.mxu3 %v462_v4  ;;  %v530_v12 = vld [vmem:[%s745_s2 + $0x28] sm:$0xff]  ;;  %v539_v13 = vld [vmem:[%s745_s2 + $0x20] sm:$0xff]  ;;  %v548_v14 = vld [vmem:[%s745_s2 + $0x18] sm:$0xff]  ;;  %v396_v56 = vmov 6   ;;  %s398_s18 = smov [#allocation2]   ;;  %s318_s21 = sshll.u32 %s750_s7, 4  ;;  %s319_s21 = int_to_ptr.hbm [resolvable:$true] %s318_s21 }
   0xc   :  { %124 = vmatpush.msra.mxu0 %v485_v7  ;;  %165 = vmatpush.msra.mxu2 %v476_v6  ;;  %v557_v15 = vld [vmem:[%s745_s2 + $0x10] sm:$0xff]  ;;  %v566_v16 = vld [vmem:[%s745_s2 + $0x8] sm:$0xff]  ;;  %v575_v17 = vld [vmem:[%s745_s2] sm:$0xff]  ;;  %s316_s19 = sshll.u32 %s398_s18, 4  ;;  %s317_s19 = int_to_ptr.vmem [resolvable:$true] %s316_s19 }
   0xd   :  { %145 = vmatpush.msra.mxu1 %v485_v7  ;;  %186 = vmatpush.msra.mxu3 %v476_v6  ;;  %v63_v18 = vld [vmem:[%s749_s6] sm:$0xff]  ;;  %v60_v63 = vld [vmem:[%s746_s3 + $0x78] sm:$0xff]  ;;  %v58_v2 = vld [vmem:[%s746_s3 + $0x68] sm:$0xff] }
   0xe   :  { %125 = vmatpush.msra.mxu0 %v494_v8  ;;  %166 = vmatpush.msra.mxu2 %v485_v7  ;;  %v660_v20 = vld [vmem:[%s744_s1] ss:$0 sm:$0xff] }
   0xf   :  { %146 = vmatpush.msra.mxu1 %v494_v8  ;;  %187 = vmatpush.msra.mxu3 %v485_v7  ;;  %v666_v23 = vld [vmem:[%s747_s4] ss:$0 sm:$0xff] }
  0x10   :  { %126 = vmatpush.msra.mxu0 %v503_v9  ;;  %167 = vmatpush.msra.mxu2 %v494_v8 }
  0x11   :  { %147 = vmatpush.msra.mxu1 %v503_v9  ;;  %188 = vmatpush.msra.mxu3 %v494_v8 }
  0x12   :  { %127 = vmatpush.msra.mxu0 %v512_v10  ;;  %168 = vmatpush.msra.mxu2 %v503_v9 }
  0x13   :  { %148 = vmatpush.msra.mxu1 %v512_v10  ;;  %189 = vmatpush.msra.mxu3 %v503_v9 }
  0x14   :  { %128 = vmatpush.msra.mxu0 %v521_v11  ;;  %169 = vmatpush.msra.mxu2 %v512_v10 }
  0x15   :  { %149 = vmatpush.msra.mxu1 %v521_v11  ;;  %190 = vmatpush.msra.mxu3 %v512_v10 }
  0x16   :  { %129 = vmatpush.msra.mxu0 %v530_v12  ;;  %170 = vmatpush.msra.mxu2 %v521_v11 }
  0x17   :  { %150 = vmatpush.msra.mxu1 %v530_v12  ;;  %191 = vmatpush.msra.mxu3 %v521_v11 }
  0x18   :  { %130 = vmatpush.msra.mxu0 %v539_v13  ;;  %171 = vmatpush.msra.mxu2 %v530_v12 }
  0x19   :  { %151 = vmatpush.msra.mxu1 %v539_v13  ;;  %192 = vmatpush.msra.mxu3 %v530_v12 }
  0x1a   :  { %131 = vmatpush.msra.mxu0 %v548_v14  ;;  %172 = vmatpush.msra.mxu2 %v539_v13 }
  0x1b   :  { %152 = vmatpush.msra.mxu1 %v548_v14  ;;  %193 = vmatpush.msra.mxu3 %v539_v13 }
  0x1c   :  { %132 = vmatpush.msra.mxu0 %v557_v15  ;;  %173 = vmatpush.msra.mxu2 %v548_v14 }
  0x1d   :  { %153 = vmatpush.msra.mxu1 %v557_v15  ;;  %194 = vmatpush.msra.mxu3 %v548_v14 }
  0x1e   :  { %133 = vmatpush.msra.mxu0 %v566_v16  ;;  %174 = vmatpush.msra.mxu2 %v557_v15 }
  0x1f   :  { %154 = vmatpush.msra.mxu1 %v566_v16  ;;  %195 = vmatpush.msra.mxu3 %v557_v15 }
  0x20   :  { %134 = vmatpush.msra.mxu0 %v575_v17  ;;  %175 = vmatpush.msra.mxu2 %v566_v16 }
  0x21   :  { %135 = vmatmul.f32.vlgmr.msra.gmra.mxu0 %v63_v18  ;;  %155 = vmatpush.msra.mxu1 %v575_v17  ;;  %v48_v18 = vld [vmem:[%s746_s3 + $0x18] sm:$0xff] }
  0x22   :  { %176 = vmatpush.msra.mxu2 %v575_v17  ;;  %196 = vmatpush.msra.mxu3 %v566_v16 }
  0x23   :  { %203 = vmatpush.msrb.mxu0 %v442_v0  ;;  %224 = vmatpush.msrb.mxu1 %v442_v0 }
  0x24   :  { %197 = vmatpush.msra.mxu3 %v575_v17  ;;  %245 = vmatpush.msrb.mxu2 %v442_v0 }
  0x25   :  { %204 = vmatpush.msrb.mxu0 %v447_v1  ;;  %225 = vmatpush.msrb.mxu1 %v447_v1 }
  0x26   :  { %246 = vmatpush.msrb.mxu2 %v447_v1  ;;  %266 = vmatpush.msrb.mxu3 %v442_v0  ;;  %v59_v0 = vld [vmem:[%s746_s3 + $0x70] sm:$0xff] }
  0x27   :  { %205 = vmatpush.msrb.mxu0 %v453_v3  ;;  %226 = vmatpush.msrb.mxu1 %v453_v3 }
  0x28   :  { %247 = vmatpush.msrb.mxu2 %v453_v3  ;;  %267 = vmatpush.msrb.mxu3 %v447_v1  ;;  %v397_v1 = vmov 7  }
  0x29   :  { %206 = vmatpush.msrb.mxu0 %v462_v4  ;;  %227 = vmatpush.msrb.mxu1 %v462_v4 }
  0x2a   :  { %248 = vmatpush.msrb.mxu2 %v462_v4  ;;  %268 = vmatpush.msrb.mxu3 %v453_v3  ;;  %v57_v3 = vld [vmem:[%s746_s3 + $0x60] sm:$0xff] }
  0x2b   :  { %207 = vmatpush.msrb.mxu0 %v476_v6  ;;  %228 = vmatpush.msrb.mxu1 %v476_v6 }
  0x2c   :  { %249 = vmatpush.msrb.mxu2 %v476_v6  ;;  %269 = vmatpush.msrb.mxu3 %v462_v4  ;;  %v56_v4 = vld [vmem:[%s746_s3 + $0x58] sm:$0xff] }
  0x2d   :  { %208 = vmatpush.msrb.mxu0 %v485_v7  ;;  %229 = vmatpush.msrb.mxu1 %v485_v7 }
  0x2e   :  { %250 = vmatpush.msrb.mxu2 %v485_v7  ;;  %270 = vmatpush.msrb.mxu3 %v476_v6  ;;  %v54_v6 = vld [vmem:[%s746_s3 + $0x48] sm:$0xff] }
  0x2f   :  { %209 = vmatpush.msrb.mxu0 %v494_v8  ;;  %230 = vmatpush.msrb.mxu1 %v494_v8 }
  0x30   :  { %251 = vmatpush.msrb.mxu2 %v494_v8  ;;  %271 = vmatpush.msrb.mxu3 %v485_v7 }
  0x31   :  { %210 = vmatpush.msrb.mxu0 %v503_v9  ;;  %231 = vmatpush.msrb.mxu1 %v503_v9 }
  0x32   :  { %252 = vmatpush.msrb.mxu2 %v503_v9  ;;  %272 = vmatpush.msrb.mxu3 %v494_v8  ;;  %v53_v8 = vld [vmem:[%s746_s3 + $0x40] sm:$0xff] }
  0x33   :  { %211 = vmatpush.msrb.mxu0 %v512_v10  ;;  %232 = vmatpush.msrb.mxu1 %v512_v10 }
  0x34   :  { %253 = vmatpush.msrb.mxu2 %v512_v10  ;;  %273 = vmatpush.msrb.mxu3 %v503_v9  ;;  %v52_v9 = vld [vmem:[%s746_s3 + $0x38] sm:$0xff] }
  0x35   :  { %212 = vmatpush.msrb.mxu0 %v521_v11  ;;  %233 = vmatpush.msrb.mxu1 %v521_v11 }
  0x36   :  { %254 = vmatpush.msrb.mxu2 %v521_v11  ;;  %274 = vmatpush.msrb.mxu3 %v512_v10 }
  0x37   :  { %213 = vmatpush.msrb.mxu0 %v530_v12  ;;  %234 = vmatpush.msrb.mxu1 %v530_v12 }
  0x38   :  { %255 = vmatpush.msrb.mxu2 %v530_v12  ;;  %275 = vmatpush.msrb.mxu3 %v521_v11 }
  0x39   :  { %214 = vmatpush.msrb.mxu0 %v539_v13  ;;  %235 = vmatpush.msrb.mxu1 %v539_v13 }
  0x3a   :  { %256 = vmatpush.msrb.mxu2 %v539_v13  ;;  %276 = vmatpush.msrb.mxu3 %v530_v12 }
  0x3b   :  { %215 = vmatpush.msrb.mxu0 %v548_v14  ;;  %236 = vmatpush.msrb.mxu1 %v548_v14 }
  0x3c   :  { %257 = vmatpush.msrb.mxu2 %v548_v14  ;;  %277 = vmatpush.msrb.mxu3 %v539_v13 }
  0x3d   :  { %216 = vmatpush.msrb.mxu0 %v557_v15  ;;  %237 = vmatpush.msrb.mxu1 %v557_v15 }
  0x3e   :  { %258 = vmatpush.msrb.mxu2 %v557_v15  ;;  %278 = vmatpush.msrb.mxu3 %v548_v14 }
  0x3f   :  { %217 = vmatpush.msrb.mxu0 %v566_v16  ;;  %238 = vmatpush.msrb.mxu1 %v566_v16 }
  0x40   :  { %259 = vmatpush.msrb.mxu2 %v566_v16  ;;  %279 = vmatpush.msrb.mxu3 %v557_v15  ;;  %v51_v15 = vld [vmem:[%s746_s3 + $0x30] sm:$0xff] }
  0x41   :  { %218 = vmatpush.msrb.mxu0 %v575_v17  ;;  %239 = vmatpush.msrb.mxu1 %v575_v17 }
  0x42   :  { %260 = vmatpush.msrb.mxu2 %v575_v17  ;;  %280 = vmatpush.msrb.mxu3 %v566_v16  ;;  %v50_v16 = vld [vmem:[%s746_s3 + $0x28] sm:$0xff] }
  0x43   :  { %337 = vset.pattern.permute.xlu0 %v391_v19  ;;  %338 = vset.pattern.permute.xlu1 %v392_v28  ;;  %v47_v19 = vld [vmem:[%s746_s3 + $0x10] sm:$0xff] }
  0x44   :  { %281 = vmatpush.msrb.mxu3 %v575_v17  ;;  %78 = vperm.xlu0 %337, %v470_v5   ;;  %v49_v17 = vld [vmem:[%s746_s3 + $0x20] sm:$0xff] }
  0x45   :  { %84 = vperm.xlu1 %338, %v470_v5   ;;  %340 = vset.pattern.permute.xlu2 %v394_v42 }
  0x46   :  { %96 = vperm.xlu2 %340, %v470_v5   ;;  %290 = vmatpush.msra.mxu0 %v60_v63 }
  0x48   :  { %291 = vmatpush.msra.mxu0 %v59_v0 }
  0x4a   :  { %292 = vmatpush.msra.mxu0 %v58_v2 }
  0x4c   :  { %344 = vset.pattern.permute.xlu0 %v397_v1  ;;  %293 = vmatpush.msra.mxu0 %v57_v3 }
  0x4d   :  { %339 = vset.pattern.permute.xlu1 %v393_v35 }
  0x4e   :  { %90 = vperm.xlu1 %339, %v470_v5   ;;  %341 = vset.pattern.permute.xlu2 %v395_v49 }
  0x4f   :  { %102 = vperm.xlu2 %341, %v470_v5   ;;  %294 = vmatpush.msra.mxu0 %v56_v4 }
  0x56   :  { %342 = vset.pattern.permute.xlu1 %v396_v56 }
  0x57   :  { %108 = vperm.xlu1 %342, %v470_v5   ;;  %343 = vset.pattern.permute.xlu2 %v397_v1 }
  0x58   :  { %114 = vperm.xlu2 %343, %v470_v5   ;;  %v55_v5 = vld [vmem:[%s746_s3 + $0x50] sm:$0xff] }
  0x59   :  { %295 = vmatpush.msra.mxu0 %v55_v5 }
  0x5b   :  { %296 = vmatpush.msra.mxu0 %v54_v6 }
  0x5d   :  { %297 = vmatpush.msra.mxu0 %v53_v8 }
  0x5f   :  { %298 = vmatpush.msra.mxu0 %v52_v9 }
  0x61   :  { %299 = vmatpush.msra.mxu0 %v51_v15 }
  0x63   :  { %300 = vmatpush.msra.mxu0 %v50_v16 }
  0x65   :  { %301 = vmatpush.msra.mxu0 %v49_v17 }
  0x67   :  { %302 = vmatpush.msra.mxu0 %v48_v18 }
  0x69   :  { %303 = vmatpush.msra.mxu0 %v47_v19 }
  0x78   :  { %v67_v21 = vpop.permute.xlu0 %66 }
  0x79   :  { %v72_v22 = vmul.f32 %v660_v20, %v67_v21  ;;  %v46_v21 = vld [vmem:[%s746_s3 + $0x8] sm:$0xff] }
  0x7a   :  { %304 = vmatpush.msra.mxu0 %v46_v21 }
  0x7b   :  { %v76_v24 = vadd.f32 %v666_v23, %v72_v22  ;;  %v45_v22 = vld [vmem:[%s746_s3] sm:$0xff] }
  0x7c   :  { %305 = vmatpush.msra.mxu0 %v45_v22 }
  0x9e   :  { %v136_v25 = vpop.f32.mrf.mxu0 }
  0x9f   :  { %v137_v26 = vadd.f32 %v136_v25, %v76_v24 }
  0xa0   :  { %v97_v50 = vpop.permute.xlu2 %96 }
  0xa1   :  { %348 = vtanh.f32 %v137_v26  ;;  %v99_v51 = vmul.f32 %v660_v20, %v97_v50 }
  0xa3   :  { %v100_v52 = vadd.f32 %v666_v23, %v99_v51 }
  0xa7   :  { %v349_v27 = vpop.eup %348 }
  0xa8   :  { %156 = vmatmul.f32.vlgmr.msra.gmra.mxu1 %v349_v27 }
  0xa9   :  { %v103_v57 = vpop.permute.xlu2 %102 }
  0xaa   :  { %v105_v58 = vmul.f32 %v660_v20, %v103_v57 }
  0xac   :  { %v106_v59 = vadd.f32 %v666_v23, %v105_v58 }
  0xb2   :  { %v115_v24 = vpop.permute.xlu2 %114 }
  0xb3   :  { %v117_v25 = vmul.f32 %v660_v20, %v115_v24 }
  0xb5   :  { %v118_v26 = vadd.f32 %v666_v23, %v117_v25 }
  0xb6   :  { %v79_v29 = vpop.permute.xlu0 %78 }
  0xb7   :  { %v81_v30 = vmul.f32 %v660_v20, %v79_v29  ;;  %v85_v36 = vpop.permute.xlu1 %84 }
  0xb8   :  { %v87_v37 = vmul.f32 %v660_v20, %v85_v36 }
  0xb9   :  { %v82_v31 = vadd.f32 %v666_v23, %v81_v30  ;;  %v347_v30 = vld [vmem:[%s748_s5] ss:$0 sm:$0xff] }
  0xba   :  { %v88_v38 = vadd.f32 %v666_v23, %v87_v37 }
  0xc0   :  { %v91_v43 = vpop.permute.xlu1 %90 }
  0xc1   :  { %v93_v44 = vmul.f32 %v660_v20, %v91_v43 }
  0xc3   :  { %v94_v45 = vadd.f32 %v666_v23, %v93_v44 }
  0xc9   :  { %v109_v7 = vpop.permute.xlu1 %108 }
  0xca   :  { %v111_v10 = vmul.f32 %v660_v20, %v109_v7 }
  0xcc   :  { %v112_v11 = vadd.f32 %v666_v23, %v111_v10 }
 0x125   :  { %v157_v32 = vpop.f32.mrf.mxu1 }
 0x126   :  { %v158_v33 = vadd.f32 %v157_v32, %v82_v31 }
 0x128   :  { %350 = vtanh.f32 %v158_v33 }
 0x12e   :  { %v351_v34 = vpop.eup %350 }
 0x12f   :  { %177 = vmatmul.f32.vlgmr.msra.gmra.mxu2 %v351_v34 }
 0x1b2   :  { %v178_v39 = vpop.f32.mrf.mxu2 }
 0x1b3   :  { %v179_v40 = vadd.f32 %v178_v39, %v88_v38 }
 0x1b5   :  { %352 = vtanh.f32 %v179_v40 }
 0x1bb   :  { %v353_v41 = vpop.eup %352 }
 0x1bc   :  { %198 = vmatmul.f32.vlgmr.msra.gmra.mxu3 %v353_v41 }
 0x23f   :  { %v199_v46 = vpop.f32.mrf.mxu3 }
 0x240   :  { %v200_v47 = vadd.f32 %v199_v46, %v94_v45 }
 0x242   :  { %354 = vtanh.f32 %v200_v47 }
 0x248   :  { %v355_v48 = vpop.eup %354 }
 0x249   :  { %219 = vmatmul.f32.vlgmr.msrb.gmra.mxu0 %v355_v48 }
 0x2c6   :  { %v220_v53 = vpop.f32.mrf.mxu0 }
 0x2c7   :  { %v221_v54 = vadd.f32 %v220_v53, %v100_v52 }
 0x2c9   :  { %356 = vtanh.f32 %v221_v54 }
 0x2cf   :  { %v357_v55 = vpop.eup %356 }
 0x2d0   :  { %240 = vmatmul.f32.vlgmr.msrb.gmra.mxu1 %v357_v55 }
 0x34d   :  { %v241_v60 = vpop.f32.mrf.mxu1 }
 0x34e   :  { %v242_v61 = vadd.f32 %v241_v60, %v106_v59 }
 0x350   :  { %358 = vtanh.f32 %v242_v61 }
 0x356   :  { %v359_v62 = vpop.eup %358 }
 0x357   :  { %261 = vmatmul.f32.vlgmr.msrb.gmra.mxu2 %v359_v62 }
 0x3da   :  { %v262_v12 = vpop.f32.mrf.mxu2 }
 0x3db   :  { %v263_v13 = vadd.f32 %v262_v12, %v112_v11 }
 0x3dd   :  { %360 = vtanh.f32 %v263_v13 }
 0x3e3   :  { %v361_v14 = vpop.eup %360 }
 0x3e4   :  { %282 = vmatmul.f32.vlgmr.msrb.gmra.mxu3 %v361_v14 }
 0x467   :  { %v283_v27 = vpop.f32.mrf.mxu3 }
 0x468   :  { %v284_v28 = vadd.f32 %v283_v27, %v118_v26 }
 0x46a   :  { %362 = vtanh.f32 %v284_v28 }
 0x470   :  { %v363_v29 = vpop.eup %362 }
 0x471   :  { %306 = vmatmul.f32.vlgmr.msra.gmra.mxu0 %v363_v29 }
 0x4ee   :  { %v307_v31 = vpop.f32.mrf.mxu0 }
 0x4ef   :  { %v308_v32 = vadd.f32 %v347_v30, %v307_v31 }
 0x4f1   :  { %310 = vst [vmem:[#allocation2] sm:$0xff] %v308_v32 }
 0x4f2   :  { %321 = dma.vmem_to_hbm [thread:$0]  %s317_s19, 128, %s319_s21, [#allocation3]  }
 0x4f3   :  { %388 = dma.done.wait [#allocation3], 128  }
 0x4f4   :  { %389 = vsyncadd [#allocation3], 4294967168 }
 0x4f5   :  { %326 = vsyncpa [#allocation3], 1 }

</bundles_post_ra>
